<compile_context>
chip_gen: v6e
topology: v6e:2x2x1
jax: 0.10.0
libtpu: 0.0.40
codegen_flags: <defaults>
</compile_context>

<pallas_src>
import functools

import jax
import jax.numpy as jnp
from jax.experimental import pallas as pl
from jax.experimental.pallas import tpu as pltpu

N_LAYERS = 2
N_UNITS = [32, 32]
IN_FEATURES = 3
OUT_FEATURES = 1
IN_PAD = 8  # sublane-aligned padded input-feature count (3 -> 8)


def _mlp_kernel(n_hidden, *refs):
    # refs = (x_ref, w0, b0, w1, b1, ..., w_last, b_last, o_ref)
    # x_ref: (IN_PAD, tile_b)   [batch on the 128-lane axis, rows >= IN_FEATURES are zero]
    # w_i:   (out_i, in_i)      [PyTorch layout; w0 padded to (out_0, IN_PAD)]
    # b_i:   (out_i, 1)
    # o_ref: (OUT_FEATURES, tile_b)
    x_ref = refs[0]
    o_ref = refs[-1]
    p = refs[1:-1]

    h = x_ref[...]                                      # (IN_PAD, tile_b) f32

    # ---- Hidden layers (including layer 0): MXU matmuls, feature-major, f32 accumulation ----
    for li in range(n_hidden):
        w = p[2 * li][...]                              # (out, in)
        b = p[2 * li + 1][...]                          # (out, 1)
        h = jnp.dot(w, h, preferred_element_type=jnp.float32) + b
        h = jnp.maximum(h, 0.0)                         # hidden_activation = ReLU

    # ---- Output layer: Linear + Identity ----
    w = p[2 * n_hidden][...]                            # (1, n_units[-1])
    b = p[2 * n_hidden + 1][...]                        # (1, 1)
    out = jnp.dot(w, h, preferred_element_type=jnp.float32) + b
    o_ref[...] = out.astype(o_ref.dtype)                # lane-dense (1, tile_b) store


def mlp_forward(x, params, *, tile_b=16384):
    """x: (batch, 3) f32; params: list of (W, b) with W as (out, in), b as (out, 1)."""
    batch, in_features = x.shape
    n_hidden = len(params) - 1
    out_features = params[-1][0].shape[0]

    lane = 128
    # Lane tile: multiple of 128, large (amortize per-step overhead), but capped so the grid
    # has >= 2 steps when possible (v7x has 2 TensorCores; on v5e/v6e the cap is harmless).
    batch128 = pl.cdiv(batch, lane) * lane
    half = pl.cdiv(pl.cdiv(batch128, 2), lane) * lane
    tile_req = max(lane, (int(tile_b) // lane) * lane)
    tile_b = max(lane, min(tile_req, half))
    padded = pl.cdiv(batch, tile_b) * tile_b
    grid = (padded // tile_b,)

    # Single fused pad: transpose to feature-major and zero-pad both the feature rows
    # (in_features -> IN_PAD) and the batch columns (batch -> padded).
    x_t = jnp.pad(x.astype(jnp.float32).T,
                  ((0, IN_PAD - in_features), (0, padded - batch)))

    # Zero-pad W0's input dim to IN_PAD so layer 0 is a sublane-aligned MXU matmul.
    w0, b0 = params[0]
    w0 = jnp.pad(w0.astype(jnp.float32), ((0, 0), (0, IN_PAD - in_features)))
    padded_params = [(w0, b0)] + list(params[1:])

    in_specs = [pl.BlockSpec((IN_PAD, tile_b), lambda i: (0, i))]
    flat_params = []
    for (w, b) in padded_params:
        # Replicated (constant block index) -> stays VMEM-resident across grid steps.
        in_specs.append(pl.BlockSpec(w.shape, lambda i: (0, 0)))
        in_specs.append(pl.BlockSpec(b.shape, lambda i: (0, 0)))
        flat_params.extend([w, b])

    out_specs = pl.BlockSpec((out_features, tile_b), lambda i: (0, i))

    flops = 2 * padded * sum(int(w.shape[0]) * int(w.shape[1]) for (w, _) in padded_params)
    bytes_accessed = (padded * (IN_PAD + out_features) * 4
                      + sum(int(w.size) * 4 + int(b.size) * 4 for (w, b) in padded_params))

    kernel = functools.partial(_mlp_kernel, n_hidden)

    out_t = pl.pallas_call(
        kernel,
        out_shape=jax.ShapeDtypeStruct((out_features, padded), jnp.float32),
        grid_spec=pl.GridSpec(
            grid=grid,
            in_specs=in_specs,
            out_specs=out_specs,
        ),
        compiler_params=pltpu.CompilerParams(
            dimension_semantics=("parallel",),
        ),
        cost_estimate=pl.CostEstimate(
            flops=int(flops), transcendentals=0, bytes_accessed=int(bytes_accessed)),
    )(x_t, *flat_params)

    # Back to PyTorch layout: (batch, out_features). Cheap XLA slice/transpose outside kernel.
    return out_t[:, :batch].T


def init_params(key):
    """Deterministic init mimicking nn.Linear (W stored PyTorch-style: (out, in); b as (out, 1))."""
    dims = [IN_FEATURES] + N_UNITS + [OUT_FEATURES]
    params = []
    for i in range(len(dims) - 1):
        fan_in, fan_out = dims[i], dims[i + 1]
        key, kw, kb = jax.random.split(key, 3)
        bound = 1.0 / (fan_in ** 0.5)
        w = jax.random.uniform(kw, (fan_out, fan_in), jnp.float32, -bound, bound)
        b = jax.random.uniform(kb, (fan_out, 1), jnp.float32, -bound, bound)
        params.append((w, b))
    return params


def reference_forward(x, params):
    """Plain-JAX reference of the PyTorch forward (x @ W.T + b)."""
    h = x
    for (w, b) in params[:-1]:
        h = jnp.maximum(h @ w.T + b[:, 0], 0.0)
    w, b = params[-1]
    return h @ w.T + b[:, 0]  # Identity output activation


if __name__ == "__main__":
    key = jax.random.PRNGKey(0)
    key, kx = jax.random.split(key)

    batch = 2000  # not a multiple of 128: exercises padding to 2048 and a 2-step grid
    x = jax.random.normal(kx, (batch, IN_FEATURES), dtype=jnp.float32)
    params = init_params(key)

    out = mlp_forward(x, params)
    out = jax.block_until_ready(out)

    ref = reference_forward(x, params)
    assert out.shape == (batch, OUT_FEATURES), out.shape
    err = float(jnp.max(jnp.abs(out - ref)))
    assert jnp.allclose(out, ref, atol=1e-4, rtol=1e-4), f"mismatch vs reference, max err={err}"

    print("KERNEL_OK")
</pallas_src>

<mosaic_0001>
module attributes {stable_mosaic.version = 11 : i64} {
  func.func @_mlp_kernel(%arg0: i32, %arg1: memref<8x1024xf32, #tpu.memory_space<vmem>>, %arg2: memref<32x8xf32, #tpu.memory_space<vmem>>, %arg3: memref<32x1xf32, #tpu.memory_space<vmem>>, %arg4: memref<32x32xf32, #tpu.memory_space<vmem>>, %arg5: memref<32x1xf32, #tpu.memory_space<vmem>>, %arg6: memref<1x32xf32, #tpu.memory_space<vmem>>, %arg7: memref<1x1xf32, #tpu.memory_space<vmem>>, %arg8: memref<1x1024xf32, #tpu.memory_space<vmem>>) attributes {dimension_semantics = [#tpu.dimension_semantics<parallel>], iteration_bounds = array<i64: 2>, scalar_prefetch = 0 : i64, scratch_operands = 0 : i64, tpu.core_type = #tpu.core_type<tc>, window_params = [{transform_indices = @transform_0, window_bounds = array<i64: 8, 1024>}, {pipeline_mode = #tpu.pipeline_mode<synchronous>, transform_indices = @transform_1, window_bounds = array<i64: 32, 8>}, {pipeline_mode = #tpu.pipeline_mode<synchronous>, transform_indices = @transform_2, window_bounds = array<i64: 32, 1>}, {pipeline_mode = #tpu.pipeline_mode<synchronous>, transform_indices = @transform_3, window_bounds = array<i64: 32, 32>}, {pipeline_mode = #tpu.pipeline_mode<synchronous>, transform_indices = @transform_4, window_bounds = array<i64: 32, 1>}, {pipeline_mode = #tpu.pipeline_mode<synchronous>, transform_indices = @transform_5, window_bounds = array<i64: 1, 32>}, {pipeline_mode = #tpu.pipeline_mode<synchronous>, transform_indices = @transform_6, window_bounds = array<i64: 1, 1>}, {transform_indices = @transform_7, window_bounds = array<i64: 1, 1024>}]} {
    %c0 = arith.constant 0 : index
    %c0_0 = arith.constant 0 : index
    %0 = vector.load %arg1[%c0, %c0_0] : memref<8x1024xf32, #tpu.memory_space<vmem>>, vector<8x1024xf32>
    %c0_1 = arith.constant 0 : index
    %c0_2 = arith.constant 0 : index
    %1 = vector.load %arg2[%c0_1, %c0_2] : memref<32x8xf32, #tpu.memory_space<vmem>>, vector<32x8xf32>
    %c0_3 = arith.constant 0 : index
    %c0_4 = arith.constant 0 : index
    %2 = vector.load %arg3[%c0_3, %c0_4] : memref<32x1xf32, #tpu.memory_space<vmem>>, vector<32x1xf32>
    %cst = arith.constant dense<0.000000e+00> : vector<32x1024xf32>
    %3 = tpu.matmul %1, %0, %cst {dimension_numbers = #tpu.dot_dimension_numbers<[1], [0], [0], [1], [0, 0, 1, 1], [], []>} : vector<32x8xf32>, vector<8x1024xf32>, vector<32x1024xf32> -> vector<32x1024xf32>
    %4 = vector.broadcast %2 : vector<32x1xf32> to vector<32x1024xf32>
    %5 = arith.addf %3, %4 : vector<32x1024xf32>
    %cst_5 = arith.constant 0.000000e+00 : f32
    %6 = vector.broadcast %cst_5 : f32 to vector<32x1024xf32>
    %7 = arith.maximumf %5, %6 : vector<32x1024xf32>
    %c0_6 = arith.constant 0 : index
    %c0_7 = arith.constant 0 : index
    %8 = vector.load %arg4[%c0_6, %c0_7] : memref<32x32xf32, #tpu.memory_space<vmem>>, vector<32x32xf32>
    %c0_8 = arith.constant 0 : index
    %c0_9 = arith.constant 0 : index
    %9 = vector.load %arg5[%c0_8, %c0_9] : memref<32x1xf32, #tpu.memory_space<vmem>>, vector<32x1xf32>
    %cst_10 = arith.constant dense<0.000000e+00> : vector<32x1024xf32>
    %10 = tpu.matmul %8, %7, %cst_10 {dimension_numbers = #tpu.dot_dimension_numbers<[1], [0], [0], [1], [0, 0, 1, 1], [], []>} : vector<32x32xf32>, vector<32x1024xf32>, vector<32x1024xf32> -> vector<32x1024xf32>
    %11 = vector.broadcast %9 : vector<32x1xf32> to vector<32x1024xf32>
    %12 = arith.addf %10, %11 : vector<32x1024xf32>
    %cst_11 = arith.constant 0.000000e+00 : f32
    %13 = vector.broadcast %cst_11 : f32 to vector<32x1024xf32>
    %14 = arith.maximumf %12, %13 : vector<32x1024xf32>
    %c0_12 = arith.constant 0 : index
    %c0_13 = arith.constant 0 : index
    %15 = vector.load %arg6[%c0_12, %c0_13] : memref<1x32xf32, #tpu.memory_space<vmem>>, vector<1x32xf32>
    %c0_14 = arith.constant 0 : index
    %c0_15 = arith.constant 0 : index
    %16 = vector.load %arg7[%c0_14, %c0_15] : memref<1x1xf32, #tpu.memory_space<vmem>>, vector<1x1xf32>
    %cst_16 = arith.constant dense<0.000000e+00> : vector<1x1024xf32>
    %17 = tpu.matmul %15, %14, %cst_16 {dimension_numbers = #tpu.dot_dimension_numbers<[1], [0], [0], [1], [0, 0, 1, 1], [], []>} : vector<1x32xf32>, vector<32x1024xf32>, vector<1x1024xf32> -> vector<1x1024xf32>
    %18 = vector.broadcast %16 : vector<1x1xf32> to vector<1x1024xf32>
    %19 = arith.addf %17, %18 : vector<1x1024xf32>
    %c0_17 = arith.constant 0 : index
    %c0_18 = arith.constant 0 : index
    %20 = vector.load %arg8[%c0_17, %c0_18] : memref<1x1024xf32, #tpu.memory_space<vmem>>, vector<1x1024xf32>
    tpu.vector_store %arg8[%c0_17, %c0_18], %19 {strides = array<i32>} : memref<1x1024xf32, #tpu.memory_space<vmem>>, vector<1x1024xf32>,
    return
  }
  func.func @transform_0(%arg0: i32) -> (i32, i32) {
    %c0_i32 = arith.constant 0 : i32
    %c0_i32_0 = arith.constant 0 : i32
    return %c0_i32, %arg0 : i32, i32
  }
  func.func @transform_1(%arg0: i32) -> (i32, i32) {
    %c0_i32 = arith.constant 0 : i32
    %c0_i32_0 = arith.constant 0 : i32
    %c0_i32_1 = arith.constant 0 : i32
    return %c0_i32, %c0_i32_0 : i32, i32
  }
  func.func @transform_2(%arg0: i32) -> (i32, i32) {
    %c0_i32 = arith.constant 0 : i32
    %c0_i32_0 = arith.constant 0 : i32
    %c0_i32_1 = arith.constant 0 : i32
    return %c0_i32, %c0_i32_0 : i32, i32
  }
  func.func @transform_3(%arg0: i32) -> (i32, i32) {
    %c0_i32 = arith.constant 0 : i32
    %c0_i32_0 = arith.constant 0 : i32
    %c0_i32_1 = arith.constant 0 : i32
    return %c0_i32, %c0_i32_0 : i32, i32
  }
  func.func @transform_4(%arg0: i32) -> (i32, i32) {
    %c0_i32 = arith.constant 0 : i32
    %c0_i32_0 = arith.constant 0 : i32
    %c0_i32_1 = arith.constant 0 : i32
    return %c0_i32, %c0_i32_0 : i32, i32
  }
  func.func @transform_5(%arg0: i32) -> (i32, i32) {
    %c0_i32 = arith.constant 0 : i32
    %c0_i32_0 = arith.constant 0 : i32
    %c0_i32_1 = arith.constant 0 : i32
    return %c0_i32, %c0_i32_0 : i32, i32
  }
  func.func @transform_6(%arg0: i32) -> (i32, i32) {
    %c0_i32 = arith.constant 0 : i32
    %c0_i32_0 = arith.constant 0 : i32
    %c0_i32_1 = arith.constant 0 : i32
    return %c0_i32, %c0_i32_0 : i32, i32
  }
  func.func @transform_7(%arg0: i32) -> (i32, i32) {
    %c0_i32 = arith.constant 0 : i32
    %c0_i32_0 = arith.constant 0 : i32
    return %c0_i32, %arg0 : i32, i32
  }
}

</mosaic_0001>

<bundles_post_ra>
// kernel: tpu_custom_call.1
= control target key start
LH: loop header
LB: loop body
LE: loop exit
PB: predicated region body
PF: predicated region fallthrough
CT: control target
= control target key end

     0   :  { %s2239_s0 = inlined_call_operand.hbm [shape: f32[8,2048], index: 0, kind: input, shape index: {}]   ;;  %s2240_s1 = inlined_call_operand.vmem [shape: f32[32,8], index: 1, kind: input, shape index: {}]   ;;  %s2241_s2 = inlined_call_operand.vmem [shape: f32[32,1], index: 2, kind: input, shape index: {}]   ;;  %s2242_s3 = inlined_call_operand.vmem [shape: f32[32,32], index: 3, kind: input, shape index: {}]   ;;  %s2243_s4 = inlined_call_operand.vmem [shape: f32[32,1], index: 4, kind: input, shape index: {}]   ;;  %s2244_s5 = inlined_call_operand.vmem [shape: f32[1,32], index: 5, kind: input, shape index: {}]   ;;  %s2245_s6 = inlined_call_operand.<no memory space> [shape: f32[1,1], index: 6, kind: input, shape index: {}]   ;;  %s2246_s7 = inlined_call_operand.hbm [shape: f32[1,2048], index: 7, kind: output, shape index: {}]  }
   0x1   :  { %v12_v0 = vstv %s2245_s6 }
   0x2   :  { %13 = vst [vmem:[#allocation2] sm:$0x1] %v12_v0 }
   0x3   :  { %14 = vsyncpa [#allocation4], 0 }
   0x4   :  { %16 = vsyncpa [#allocation4 + $0x1], 0 }
   0x5   :  { %17 = vsyncpa [#allocation5], 0 }
   0x6   :  { %19 = vsyncpa [#allocation5 + $0x1], 0  ;;  %s1852_s26 = smov 0   ;;  %s1854_s27 = smov 0  }
   0x7   :  { %s1856_s28 = smov 0   ;;  %s1858_s29 = smov 0  }
   0x8 LB: > { %s1873_s6 = sadd.s32 4294967295, %s1802_s29   ;;  %s1607_s30 = sadd.s32 4294967294, %s1802_s29   ;;  %s1802_s29 = sphi %s1858_s29, %s2263_s29   ;;  %s1798_s28 = sphi %s1856_s28, %s2262_s28   ;;  %s1794_s27 = sphi %s1854_s27, %s2261_s27   ;;  %s1790_s26 = sphi %s1852_s26, %s2260_s26  }
   0x9   : > { %s1877_s8 = sadd.s32 1, %s1802_s29   ;;  %s32_s9 = sadd.s32 1, %s1798_s28 }
   0xa   : > { %s29_s10 = ssub.s32 %s1802_s29, %s1877_s8  ;;  %p39_p0 = scmp.ne.s32.totalorder %s1798_s28, %s1794_s27 }
   0xb   : > { %p30_p1 = scmp.eq.s32.totalorder %s29_s10, 0  ;;  %p40_p2 = scmp.eq.s32.totalorder %s1802_s29, 0 }
   0xc   : > { %p45_p3 = scmp.ne.s32.totalorder %s1794_s27, %s1790_s26  ;;  %p46_p4 = scmp.eq.s32.totalorder %s1873_s6, 0 }
   0xd   : > { %s1889_s11 = scalar_select %p30_p1, %s1798_s28, %s32_s9  }
   0xe   : > { %p1891_p5 = por %p40_p2, %p39_p0  ;;  %p1895_p6 = por %p46_p4, %p45_p3 }
   0xf   : > { %p195_p7 = scmp.eq.s32.totalorder %s1873_s6, 1  ;;  %p201_p8 = scmp.eq.s32.totalorder %s1607_s30, 1 }
  0x10   : > { %s2250_s13 = scalar_select %p1895_p6, 1, 0 }
  0x11   : > { %p1671_p10 = scmp.lt.s32.totalorder %s1802_s29, 2  ;;  %p1902_p11 = por %p195_p7, %p39_p0 }
  0x12   : > { %p1906_p12 = por %p201_p8, %p45_p3  ;;  %s239_s16 = sand.u32 1, %s1798_s28  }
  0x13   : > { %s2251_s14 = scalar_select %p1902_p11, 1, 0 }
  0x14   : > { %s2252_s15 = scalar_select %p1906_p12, 1, 0 }
  0x15   : > { %s1657_s17 = sshll.u32 %s1802_s29, 10  ;;  %s1610_s18 = sshll.u32 %s239_s16, 6 }
  0x16   : > { %s1915_s21 = scalar_lea.hbm %s2239_s0, %s1657_s17  ;;  %s243_s22 = scalar_lea.vmem [#allocation3], %s1610_s18 }
  0x17   : > { %s251_s23 = sshll.u32 %s243_s22, 4  ;;  %p1919_p13 = pnand %p1671_p10, %p1891_p5  ;;  %s1923_s23 = int_to_ptr.vmem [resolvable:$true] %s251_s23 }
  0x18   : > { %s240_s25 = scalar_lea.sflag [#allocation4], %s239_s16  ;;  %s1710_s30 = scalar_lea.hbm %s1915_s21, 1024 }
  0x19   : > { %p1711_p2 = scmp.ne.s32.totalorder %s1915_s21, %s1710_s30  ;;  %p1712_p3 = pneg %p1919_p13 }
  0x1a   : > { %s1715_s12 = scalar_lea.hbm %s2239_s0, 2048  ;;  %p1716_p5 = scmp.lt.s32.totalorder %s1915_s21, %s2239_s0 }
  0x1b   : > { %p1713_p4 = pnand %p1712_p3, %p1711_p2  ;;  %p1717_p8 = scmp.lt.s32.totalorder %s1715_s12, %s1710_s30 }
  0x1d   : > { %p1714_p7 = pneg %p1713_p4  ;;  %p1718_p10 = por %p1717_p8, %p1716_p5 }
  0x1f   : > { %p1719_p9 = pnand %p1718_p10, %p1714_p7 }
  0x21   : > { %1722 = shalt.err (!%p1719_p9)
}
  0x22   : > { %s1723_s16 = scalar_lea.vmem %s1923_s23, 1024  ;;  %s1804_s19 = smov [#allocation3]  }
  0x23   : > { %p1724_p0 = scmp.ne.s32.totalorder %s1923_s23, %s1723_s16  ;;  %s1728_s20 = sshll.u32 %s1804_s19, 4  ;;  %s1729_s20 = int_to_ptr.vmem [resolvable:$false] %s1728_s20 }
  0x24   : > { %s1730_s22 = scalar_lea.vmem %s1729_s20, 2048  ;;  %p1731_p4 = scmp.lt.s32.totalorder %s1923_s23, %s1729_s20 }
  0x25   : > { %p1726_p1 = pnand %p1724_p0, %p1712_p3  ;;  %p1732_p12 = scmp.lt.s32.totalorder %s1730_s22, %s1723_s16 }
  0x27   : > { %p1727_p2 = pneg %p1726_p1  ;;  %p1733_p11 = por %p1732_p12, %p1731_p4 }
  0x29   : > { %p1734_p6 = pnand %p1733_p11, %p1727_p2 }
  0x2b   : > { %1737 = shalt.err (!%p1734_p6)
}
  0x2c   : > { %1666 = dma.hbm_to_vmem [thread:$0]  (!%p1919_p13), %s1915_s21, 1024, %s1923_s23, %s240_s25  }
  0x2d   : > { %p2254_p9 = scmp.lt.s32.totalorder %s1802_s29, 3  ;;  %p2255_p7 = scmp.ge.s32.totalorder %s1802_s29, 1 }
  0x2f   : > { %p257_p0 = pnand %p2255_p7, %p2254_p9 }
  0x30   : > { %s1950_s30 = sand.u32 (!%p257_p0), 1, %s1794_s27   ;;  %p2256_p6 = scmp.ne.s32.totalorder (!%p257_p0), %s2250_s13, 0 }
  0x31   : > { %260 = sbr.rel (%p257_p0) target bundleno = 738 (0x2e2), region = 48  ;;  %s1614_s9 = sshll.u32 (!%p257_p0), %s1950_s30, 6 }
  0x32   : > { %s263_s10 = scalar_lea.sflag (!%p257_p0), [#allocation4], %s1950_s30  ;;  %s266_s12 = scalar_lea.vmem (!%p257_p0), [#allocation3], %s1614_s9 }
  0x36   : > { %1781 = dma.done.wait (%p2256_p6), %s263_s10, 1024  }
  0x37   : > { %1783 = vsyncadd (%p2256_p6), %s263_s10, 4294966272  ;;  %v1805_v1 = vmov 0.0   ;;  %v1806_v2 = vmov 0   ;;  %v300_v3 = vld [vmem:[%s266_s12 + $0x8] sm:$0xff]  ;;  %v302_v4 = vld [vmem:[%s266_s12 + $0x18] sm:$0xff]  ;;  %vm335_vm0 = vcmask 64512  }
  0x38   : > { %412 = vmatprep.mubr.f32.mxu0 %v1805_v1  ;;  %501 = vmatprep.mubr.f32.mxu1 %v1805_v1  ;;  %v299_v5 = vld [vmem:[%s266_s12] sm:$0xff]  ;;  %v301_v6 = vld [vmem:[%s266_s12 + $0x10] sm:$0xff]  ;;  %v304_v8 = vld [vmem:[%s266_s12 + $0x28] sm:$0xff]  ;;  %vm764_vm1 = vcmask 261120   ;;  %s1615_s18 = sshll.u32 %s1950_s30, 3  ;;  %s1658_s16 = sshll.u32 %s1873_s6, 7 }
  0x39   : > { %1709 = vset.pattern.permute.xlu1 %v1806_v2  ;;  %1708 = vset.pattern.permute.xlu0 %v1806_v2  ;;  %v307_v7 = vld [vmem:[%s2240_s1] sm:$0xff]  ;;  %v305_v11 = vld [vmem:[%s266_s12 + $0x30] sm:$0xff]  ;;  %v308_v12 = vld [vmem:[%s2240_s1 + $0x8] sm:$0xff]  ;;  %s296_s19 = scalar_lea.vmem [#allocation6], %s1615_s18  ;;  %s1535_s10 = scalar_lea.hbm %s2246_s7, %s1658_s16 }
  0x3a   : > { %378 = vmatprep.subr.mxu0 %v300_v3  ;;  %467 = vmatprep.subr.mxu1 %v302_v4  ;;  %v306_v9 = vld [vmem:[%s266_s12 + $0x38] sm:$0xff]  ;;  %v303_v10 = vld [vmem:[%s266_s12 + $0x20] sm:$0xff]  ;;  %v309_v15 = vld [vmem:[%s2240_s1 + $0x10] sm:$0xff]  ;;  %s1537_s20 = sshll.u32 %s296_s19, 4  ;;  %s1523_s12 = scalar_lea.sflag [#allocation5], %s1950_s30  ;;  %s1538_s20 = int_to_ptr.vmem [resolvable:$true] %s1537_s20 }
  0x3b   : > { %379 = vmatpush1.msra.mxu0 %v299_v5  ;;  %468 = vmatpush1.msra.mxu1 %v301_v6  ;;  %v312_v13 = vld [vmem:[%s2241_s2 + $0x8] sm:$0xff]  ;;  %v314_v14 = vld [vmem:[%s2241_s2 + $0x18] sm:$0xff]  ;;  %v311_v16 = vld [vmem:[%s2241_s2] sm:$0xff]  ;;  %s1738_s21 = scalar_lea.vmem %s1538_s20, 128  ;;  %p2257_p12 = scmp.ne.s32.totalorder %s2251_s14, 0 }
  0x3c   : > { %1616 = vmatmul.mubr.msk.f32.vlgmr.msra.gmra.mxu0 %vm335_vm0, %v307_v7  ;;  %1620 = vmatmul.mubr.msk.f32.vlgmr.msra.gmra.mxu1 %vm335_vm0, %v307_v7  ;;  %v313_v17 = vld [vmem:[%s2241_s2 + $0x10] sm:$0xff]  ;;  %v310_v18 = vld [vmem:[%s2240_s1 + $0x18] sm:$0xff]  ;;  %v741_v21 = vld [vmem:[%s2243_s4 + $0x8] sm:$0xff]  ;;  %p1739_p11 = scmp.ne.s32.totalorder %s1538_s20, %s1738_s21  ;;  %s1808_s23 = smov [#allocation6]  }
  0x3d   : > { %418 = vmatprep.mubr.f32.mxu0 %v1805_v1  ;;  %507 = vmatprep.mubr.f32.mxu1 %v1805_v1  ;;  %v743_v19 = vld [vmem:[%s2243_s4 + $0x18] sm:$0xff]  ;;  %v742_v20 = vld [vmem:[%s2243_s4 + $0x10] sm:$0xff]  ;;  %v740_v22 = vld [vmem:[%s2243_s4] sm:$0xff]  ;;  %s1742_s13 = sshll.u32 %s1808_s23, 4  ;;  %s1743_s13 = int_to_ptr.vmem [resolvable:$false] %s1742_s13 }
  0x3e   : > { %556 = vmatprep.subr.mxu0 %v304_v8  ;;  %645 = vmatprep.subr.mxu1 %v306_v9  ;;  %v1166_v23 = vld [vmem:[#allocation2] sm:$0x1]  ;;  %p1740_p13 = pnand %p1739_p11, %p2257_p12  ;;  %s1744_s6 = scalar_lea.vmem %s1743_s13, 256 }
  0x3f   : > { %557 = vmatpush1.msra.mxu0 %v303_v10  ;;  %646 = vmatpush1.msra.mxu1 %v305_v11  ;;  %p1745_p3 = scmp.lt.s32.totalorder %s1538_s20, %s1743_s13  ;;  %p1746_p5 = scmp.lt.s32.totalorder %s1744_s6, %s1738_s21 }
  0x40   : > { %1617 = vmatmul.mubr.msk.f32.gmra.mxu0 %vm335_vm0, %v308_v12  ;;  %1621 = vmatmul.mubr.msk.f32.gmra.mxu1 %vm335_vm0, %v308_v12  ;;  %p1741_p1 = pneg %p1740_p13 }
  0x41   : > { %424 = vmatprep.mubr.f32.mxu0 %v1805_v1  ;;  %513 = vmatprep.mubr.f32.mxu1 %v1805_v1  ;;  %p1747_p8 = por %p1746_p5, %p1745_p3 }
  0x42   : > { %322 = vperm.xlu1 %1709, %v312_v13   ;;  %332 = vperm.xlu0 %1708, %v314_v14  }
  0x43   : > { %p1748_p10 = pnand %p1747_p8, %p1741_p1 }
  0x44   : > { %1618 = vmatmul.mubr.msk.f32.gmra.mxu0 %vm335_vm0, %v309_v15  ;;  %1622 = vmatmul.mubr.msk.f32.gmra.mxu1 %vm335_vm0, %v309_v15 }
  0x45   : > { %430 = vmatprep.mubr.f32.mxu0 %v1805_v1  ;;  %519 = vmatprep.mubr.f32.mxu1 %v1805_v1 }
  0x46   : > { %317 = vperm.xlu1 %1709, %v311_v16   ;;  %327 = vperm.xlu0 %1708, %v313_v17  }
  0x48   : > { %1619 = vmatmul.mubr.msk.f32.gmra.mxu0 %vm335_vm0, %v310_v18  ;;  %1623 = vmatmul.mubr.msk.f32.gmra.mxu1 %vm335_vm0, %v310_v18 }
  0x49   : > { %590 = vmatprep.mubr.f32.mxu0 %v1805_v1  ;;  %679 = vmatprep.mubr.f32.mxu1 %v1805_v1 }
  0x4a   : > { %761 = vperm.xlu0 %1708, %v743_v19   ;;  %756 = vperm.xlu1 %1709, %v742_v20  }
  0x4c   : > { %1624 = vmatmul.mubr.msk.f32.vlgmr.msra.gmra.mxu0 %vm335_vm0, %v307_v7  ;;  %1628 = vmatmul.mubr.msk.f32.vlgmr.msra.gmra.mxu1 %vm335_vm0, %v307_v7 }
  0x4d   : > { %596 = vmatprep.mubr.f32.mxu0 %v1805_v1  ;;  %685 = vmatprep.mubr.f32.mxu1 %v1805_v1 }
  0x4e   : > { %751 = vperm.xlu0 %1708, %v741_v21   ;;  %746 = vperm.xlu1 %1709, %v740_v22  }
  0x50   : > { %1625 = vmatmul.mubr.msk.f32.gmra.mxu0 %vm335_vm0, %v308_v12  ;;  %1629 = vmatmul.mubr.msk.f32.gmra.mxu1 %vm335_vm0, %v308_v12 }
  0x51   : > { %602 = vmatprep.mubr.f32.mxu0 %v1805_v1  ;;  %691 = vmatprep.mubr.f32.mxu1 %v1805_v1 }
  0x52   : > { %1169 = vperm.xlu0 %1708, %v1166_v23   ;;  %v2067_v23 = vld [vmem:[%s2242_s3] sm:$0xff] }
  0x54   : > { %1626 = vmatmul.mubr.msk.f32.gmra.mxu0 %vm335_vm0, %v309_v15  ;;  %1630 = vmatmul.mubr.msk.f32.gmra.mxu1 %vm335_vm0, %v309_v15 }
  0x55   : > { %608 = vmatprep.mubr.f32.mxu0 %v1805_v1  ;;  %697 = vmatprep.mubr.f32.mxu1 %v1805_v1 }
  0x58   : > { %1627 = vmatmul.mubr.msk.f32.gmra.mxu0 %vm335_vm0, %v310_v18  ;;  %1631 = vmatmul.mubr.msk.f32.gmra.mxu1 %vm335_vm0, %v310_v18 }
  0x59   : > { %841 = vmatprep.mubr.f32.mxu0 %v1805_v1  ;;  %930 = vmatprep.mubr.f32.mxu1 %v1805_v1 }
  0xbd   : > { %v2028_v32 = vpop.permute.xlu0 %332  ;;  %v2030_v37 = vpop.permute.xlu1 %322 }
  0xc1   : > { %v2032_v40 = vpop.permute.xlu0 %327  ;;  %v2046_v53 = vpop.permute.xlu1 %317 }
  0xfc   : > { %v414_v24 = vpop.f32.mrf.mxu0  ;;  %v503_v25 = vpop.f32.mrf.mxu1 }
  0xfd   : > { %v415_v5 = vadd.f32 %v414_v24, %v2046_v53  ;;  %v504_v6 = vadd.f32 %v503_v25, %v2046_v53 }
  0xfe   : > { %v416_v26 = vpop.f32.mrf.mxu0  ;;  %v505_v27 = vpop.f32.mrf.mxu1 }
  0xff   : > { %v417_v0 = vadd.f32 %v416_v26, %v2046_v53  ;;  %v506_v2 = vadd.f32 %v505_v27, %v2046_v53  ;;  %v704_v19 = vmax.f32 %v415_v5, 0.0  ;;  %v706_v20 = vmax.f32 %v504_v6, 0.0 }
 0x100   : > { %v420_v28 = vpop.f32.mrf.mxu0  ;;  %v509_v29 = vpop.f32.mrf.mxu1 }
 0x101   : > { %v421_v58 = vadd.f32 %v420_v28, %v2030_v37  ;;  %v510_v59 = vadd.f32 %v509_v29, %v2030_v37  ;;  %v705_v17 = vmax.f32 %v417_v0, 0.0  ;;  %v707_v18 = vmax.f32 %v506_v2, 0.0  ;;  %v2078_v28 = vld [vmem:[%s2242_s3 + $0x8] sm:$0xff] }
 0x102   : > { %v422_v30 = vpop.f32.mrf.mxu0  ;;  %v511_v31 = vpop.f32.mrf.mxu1 }
 0x103   : > { %v423_v54 = vadd.f32 %v422_v30, %v2030_v37  ;;  %v512_v55 = vadd.f32 %v511_v31, %v2030_v37  ;;  %v712_v13 = vmax.f32 %v421_v58, 0.0  ;;  %v714_v14 = vmax.f32 %v510_v59, 0.0  ;;  %v739_v58 = vld [vmem:[%s2242_s3 + $0x18] sm:$0xff] }
 0x104   : > { %v426_v33 = vpop.f32.mrf.mxu0  ;;  %v515_v34 = vpop.f32.mrf.mxu1 }
 0x105   : > { %v427_v49 = vadd.f32 %v426_v33, %v2032_v40  ;;  %v516_v50 = vadd.f32 %v515_v34, %v2032_v40  ;;  %v713_v11 = vmax.f32 %v423_v54, 0.0  ;;  %v715_v12 = vmax.f32 %v512_v55, 0.0 }
 0x106   : > { %v428_v35 = vpop.f32.mrf.mxu0  ;;  %v517_v36 = vpop.f32.mrf.mxu1 }
 0x107   : > { %v429_v45 = vadd.f32 %v428_v35, %v2032_v40  ;;  %v518_v46 = vadd.f32 %v517_v36, %v2032_v40  ;;  %v720_v7 = vmax.f32 %v427_v49, 0.0  ;;  %v722_v8 = vmax.f32 %v516_v50, 0.0 }
 0x108   : > { %v432_v38 = vpop.f32.mrf.mxu0  ;;  %v521_v39 = vpop.f32.mrf.mxu1 }
 0x109   : > { %v433_v41 = vadd.f32 %v432_v38, %v2028_v32  ;;  %v522_v42 = vadd.f32 %v521_v39, %v2028_v32  ;;  %v721_v3 = vmax.f32 %v429_v45, 0.0  ;;  %v723_v4 = vmax.f32 %v518_v46, 0.0  ;;  %v738_v39 = vld [vmem:[%s2242_s3 + $0x10] sm:$0xff] }
 0x10a   : > { %v434_v43 = vpop.f32.mrf.mxu0  ;;  %v523_v44 = vpop.f32.mrf.mxu1 }
 0x10b   : > { %v435_v47 = vadd.f32 %v434_v43, %v2028_v32  ;;  %v524_v48 = vadd.f32 %v523_v44, %v2028_v32  ;;  %v728_v60 = vmax.f32 %v433_v41, 0.0  ;;  %v730_v61 = vmax.f32 %v522_v42, 0.0 }
 0x10c   : > { %v2042_v51 = vpop.f32.mrf.mxu0  ;;  %v2044_v52 = vpop.f32.mrf.mxu1 }
 0x10d   : > { %v729_v56 = vmax.f32 %v435_v47, 0.0  ;;  %v731_v57 = vmax.f32 %v524_v48, 0.0  ;;  %v593_v59 = vadd.f32 %v2042_v51, %v2046_v53 }
 0x10e   : > { %v2052_v62 = vpop.f32.mrf.mxu0  ;;  %v2054_v63 = vpop.f32.mrf.mxu1 }
 0x10f   : > { %801 = vmatprep.subr.mxu0 %v729_v56  ;;  %890 = vmatprep.subr.mxu1 %v731_v57  ;;  %v595_v54 = vadd.f32 %v2052_v62, %v2046_v53  ;;  %v684_v55 = vadd.f32 %v2054_v63, %v2046_v53  ;;  %v708_v51 = vmax.f32 %v593_v59, 0.0 }
 0x110   : > { %v2060_v9 = vpop.f32.mrf.mxu0  ;;  %v2062_v10 = vpop.f32.mrf.mxu1  ;;  %802 = vmatpush1.msra.mxu0 %v728_v60  ;;  %891 = vmatpush1.msra.mxu1 %v730_v61 }
 0x111   : > { %803 = vmatprep.subr.mxu0 %v721_v3  ;;  %892 = vmatprep.subr.mxu1 %v723_v4  ;;  %v599_v50 = vadd.f32 %v2060_v9, %v2030_v37  ;;  %v709_v0 = vmax.f32 %v595_v54, 0.0  ;;  %v711_v2 = vmax.f32 %v684_v55, 0.0 }
 0x112   : > { %v600_v15 = vpop.f32.mrf.mxu0  ;;  %v689_v16 = vpop.f32.mrf.mxu1  ;;  %804 = vmatpush1.msra.mxu0 %v720_v7  ;;  %893 = vmatpush1.msra.mxu1 %v722_v8 }
 0x113   : > { %805 = vmatprep.subr.mxu0 %v713_v11  ;;  %894 = vmatprep.subr.mxu1 %v715_v12  ;;  %v601_v46 = vadd.f32 %v600_v15, %v2030_v37  ;;  %v690_v47 = vadd.f32 %v689_v16, %v2030_v37  ;;  %v716_v62 = vmax.f32 %v599_v50, 0.0  ;;  %v2144_v15 = vpop.permute.xlu1 %756 }
 0x114   : > { %v604_v21 = vpop.f32.mrf.mxu0  ;;  %v693_v22 = vpop.f32.mrf.mxu1  ;;  %806 = vmatpush1.msra.mxu0 %v712_v13  ;;  %895 = vmatpush1.msra.mxu1 %v714_v14 }
 0x115   : > { %807 = vmatprep.subr.mxu0 %v705_v17  ;;  %896 = vmatprep.subr.mxu1 %v707_v18  ;;  %v605_v42 = vadd.f32 %v604_v21, %v2032_v40  ;;  %v694_v43 = vadd.f32 %v693_v22, %v2032_v40  ;;  %v717_v60 = vmax.f32 %v601_v46, 0.0  ;;  %v719_v61 = vmax.f32 %v690_v47, 0.0  ;;  %v2142_v14 = vpop.permute.xlu0 %761 }
 0x116   : > { %v606_v24 = vpop.f32.mrf.mxu0  ;;  %v695_v25 = vpop.f32.mrf.mxu1  ;;  %808 = vmatpush1.msra.mxu0 %v704_v19  ;;  %897 = vmatpush1.msra.mxu1 %v706_v20 }
 0x117   : > { %1632 = vmatmul.mubr.msk.f32.vlgmr.msra.gmra.mxu0 %vm764_vm1, %v2067_v23  ;;  %1636 = vmatmul.mubr.msk.f32.vlgmr.msra.gmra.mxu1 %vm764_vm1, %v2067_v23  ;;  %v607_v36 = vadd.f32 %v606_v24, %v2032_v40  ;;  %v696_v38 = vadd.f32 %v695_v25, %v2032_v40  ;;  %v688_v40 = vadd.f32 %v2062_v10, %v2030_v37  ;;  %v724_v56 = vmax.f32 %v605_v42, 0.0 }
 0x118   : > { %v610_v26 = vpop.f32.mrf.mxu0  ;;  %v699_v27 = vpop.f32.mrf.mxu1  ;;  %847 = vmatprep.mubr.f32.mxu0 %v1805_v1  ;;  %936 = vmatprep.mubr.f32.mxu1 %v1805_v1  ;;  %v726_v57 = vmax.f32 %v694_v43, 0.0  ;;  %v682_v37 = vadd.f32 %v2044_v52, %v2046_v53 }
 0x119   : > { %v611_v29 = vadd.f32 %v610_v26, %v2028_v32  ;;  %v700_v33 = vadd.f32 %v699_v27, %v2028_v32  ;;  %v725_v48 = vmax.f32 %v607_v36, 0.0  ;;  %v727_v49 = vmax.f32 %v696_v38, 0.0  ;;  %v2152_v26 = vpop.permute.xlu0 %751 }
 0x11a   : > { %v612_v30 = vpop.f32.mrf.mxu0  ;;  %v701_v31 = vpop.f32.mrf.mxu1  ;;  %v718_v63 = vmax.f32 %v688_v40, 0.0  ;;  %v710_v3 = vmax.f32 %v682_v37, 0.0 }
 0x11b   : > { %v613_v34 = vadd.f32 %v612_v30, %v2028_v32  ;;  %v702_v35 = vadd.f32 %v701_v31, %v2028_v32  ;;  %1633 = vmatmul.mubr.msk.f32.gmra.mxu0 %vm764_vm1, %v2078_v28  ;;  %1637 = vmatmul.mubr.msk.f32.gmra.mxu1 %vm764_vm1, %v2078_v28  ;;  %v732_v44 = vmax.f32 %v611_v29, 0.0  ;;  %v734_v45 = vmax.f32 %v700_v33, 0.0  ;;  %v2156_v29 = vpop.permute.xlu1 %746 }
 0x11c   : > { %853 = vmatprep.mubr.f32.mxu0 %v1805_v1  ;;  %942 = vmatprep.mubr.f32.mxu1 %v1805_v1 }
 0x11d   : > { %v733_v41 = vmax.f32 %v613_v34, 0.0  ;;  %v735_v32 = vmax.f32 %v702_v35, 0.0 }
 0x11f   : > { %1634 = vmatmul.mubr.msk.f32.gmra.mxu0 %vm764_vm1, %v738_v39  ;;  %1638 = vmatmul.mubr.msk.f32.gmra.mxu1 %vm764_vm1, %v738_v39 }
 0x120   : > { %979 = vmatprep.subr.mxu0 %v733_v41  ;;  %1068 = vmatprep.subr.mxu1 %v735_v32 }
 0x121   : > { %980 = vmatpush1.msra.mxu0 %v732_v44  ;;  %1069 = vmatpush1.msra.mxu1 %v734_v45 }
 0x122   : > { %981 = vmatprep.subr.mxu0 %v725_v48  ;;  %1070 = vmatprep.subr.mxu1 %v727_v49 }
 0x123   : > { %859 = vmatprep.mubr.f32.mxu0 %v1805_v1  ;;  %948 = vmatprep.mubr.f32.mxu1 %v1805_v1 }
 0x124   : > { %982 = vmatpush1.msra.mxu0 %v724_v56  ;;  %1071 = vmatpush1.msra.mxu1 %v726_v57 }
 0x125   : > { %1635 = vmatmul.mubr.msk.f32.gmra.mxu0 %vm764_vm1, %v739_v58  ;;  %1639 = vmatmul.mubr.msk.f32.gmra.mxu1 %vm764_vm1, %v739_v58 }
 0x126   : > { %983 = vmatprep.subr.mxu0 %v717_v60  ;;  %1072 = vmatprep.subr.mxu1 %v719_v61 }
 0x127   : > { %984 = vmatpush1.msra.mxu0 %v716_v62  ;;  %1073 = vmatpush1.msra.mxu1 %v718_v63 }
 0x128   : > { %985 = vmatprep.subr.mxu0 %v709_v0  ;;  %1074 = vmatprep.subr.mxu1 %v711_v2  ;;  %v2173_v2 = vld [vmem:[%s2244_s5] sm:$0x1] }
 0x129   : > { %986 = vmatpush1.msra.mxu0 %v708_v51  ;;  %1019 = vmatprep.mubr.f32.mxu0 %v1805_v1 }
 0x12a   : > { %1075 = vmatpush1.msra.mxu1 %v710_v3  ;;  %1108 = vmatprep.mubr.f32.mxu1 %v1805_v1 }
 0x12b   : > { %1640 = vmatmul.mubr.msk.f32.vlgmr.msra.gmra.mxu0 %vm764_vm1, %v2067_v23  ;;  %1644 = vmatmul.mubr.msk.f32.vlgmr.msra.gmra.mxu1 %vm764_vm1, %v2067_v23 }
 0x12c   : > { %1025 = vmatprep.mubr.f32.mxu0 %v1805_v1  ;;  %1114 = vmatprep.mubr.f32.mxu1 %v1805_v1 }
 0x12f   : > { %1641 = vmatmul.mubr.msk.f32.gmra.mxu0 %vm764_vm1, %v2078_v28  ;;  %1645 = vmatmul.mubr.msk.f32.gmra.mxu1 %vm764_vm1, %v2078_v28 }
 0x130   : > { %1031 = vmatprep.mubr.f32.mxu0 %v1805_v1  ;;  %1120 = vmatprep.mubr.f32.mxu1 %v1805_v1 }
 0x133   : > { %1642 = vmatmul.mubr.msk.f32.gmra.mxu0 %vm764_vm1, %v738_v39  ;;  %1646 = vmatmul.mubr.msk.f32.gmra.mxu1 %vm764_vm1, %v738_v39 }
 0x134   : > { %1037 = vmatprep.mubr.f32.mxu0 %v1805_v1  ;;  %1126 = vmatprep.mubr.f32.mxu1 %v1805_v1 }
 0x137   : > { %1643 = vmatmul.mubr.msk.f32.gmra.mxu0 %vm764_vm1, %v739_v58  ;;  %1647 = vmatmul.mubr.msk.f32.gmra.mxu1 %vm764_vm1, %v739_v58 }
 0x138   : > { %1243 = vmatprep.mubr.f32.mxu0 %v1805_v1  ;;  %1314 = vmatprep.mubr.f32.mxu1 %v1805_v1 }
 0x1d7   : > { %v843_v52 = vpop.f32.mrf.mxu0  ;;  %v932_v53 = vpop.f32.mrf.mxu1 }
 0x1d8   : > { %v844_v46 = vadd.f32 %v843_v52, %v2156_v29  ;;  %v933_v47 = vadd.f32 %v932_v53, %v2156_v29 }
 0x1d9   : > { %v845_v4 = vpop.f32.mrf.mxu0  ;;  %v934_v5 = vpop.f32.mrf.mxu1 }
 0x1da   : > { %v846_v42 = vadd.f32 %v845_v4, %v2156_v29  ;;  %v935_v43 = vadd.f32 %v934_v5, %v2156_v29  ;;  %v1133_v61 = vmax.f32 %v844_v46, 0.0  ;;  %v1135_v62 = vmax.f32 %v933_v47, 0.0  ;;  %v1170_v46 = vpop.permute.xlu0 %1169 }
 0x1db   : > { %v849_v6 = vpop.f32.mrf.mxu0  ;;  %v938_v7 = vpop.f32.mrf.mxu1  ;;  %v1807_v47 = vmov 1966171168  }
 0x1dc   : > { %v850_v35 = vadd.f32 %v849_v6, %v2152_v26  ;;  %v939_v36 = vadd.f32 %v938_v7, %v2152_v26  ;;  %v1134_v37 = vmax.f32 %v846_v42, 0.0  ;;  %v1136_v60 = vmax.f32 %v935_v43, 0.0 }
 0x1dd   : > { %v851_v8 = vpop.f32.mrf.mxu0  ;;  %v940_v9 = vpop.f32.mrf.mxu1 }
 0x1de   : > { %v852_v30 = vadd.f32 %v851_v8, %v2152_v26  ;;  %v941_v31 = vadd.f32 %v940_v9, %v2152_v26  ;;  %v1141_v56 = vmax.f32 %v850_v35, 0.0  ;;  %v1143_v57 = vmax.f32 %v939_v36, 0.0 }
 0x1df   : > { %v855_v10 = vpop.f32.mrf.mxu0  ;;  %v944_v11 = vpop.f32.mrf.mxu1 }
 0x1e0   : > { %v856_v27 = vadd.f32 %v855_v10, %v2144_v15  ;;  %v945_v28 = vadd.f32 %v944_v11, %v2144_v15  ;;  %v1142_v54 = vmax.f32 %v852_v30, 0.0  ;;  %v1144_v55 = vmax.f32 %v941_v31, 0.0 }
 0x1e1   : > { %v857_v12 = vpop.f32.mrf.mxu0  ;;  %v946_v13 = vpop.f32.mrf.mxu1 }
 0x1e2   : > { %v858_v22 = vadd.f32 %v857_v12, %v2144_v15  ;;  %v947_v23 = vadd.f32 %v946_v13, %v2144_v15  ;;  %v1149_v48 = vmax.f32 %v856_v27, 0.0  ;;  %v1151_v49 = vmax.f32 %v945_v28, 0.0 }
 0x1e4   : > { %v1150_v44 = vmax.f32 %v858_v22, 0.0  ;;  %v1152_v45 = vmax.f32 %v947_v23, 0.0 }
 0x1e5   : > { %v861_v16 = vpop.f32.mrf.mxu0  ;;  %v950_v17 = vpop.f32.mrf.mxu1 }
 0x1e6   : > { %v862_v18 = vadd.f32 %v861_v16, %v2142_v14  ;;  %v951_v19 = vadd.f32 %v950_v17, %v2142_v14 }
 0x1e7   : > { %v863_v20 = vpop.f32.mrf.mxu0  ;;  %v952_v21 = vpop.f32.mrf.mxu1 }
 0x1e8   : > { %v864_v24 = vadd.f32 %v863_v20, %v2142_v14  ;;  %v953_v25 = vadd.f32 %v952_v21, %v2142_v14  ;;  %v1157_v38 = vmax.f32 %v862_v18, 0.0  ;;  %v1159_v39 = vmax.f32 %v951_v19, 0.0 }
 0x1ea   : > { %v1158_v33 = vmax.f32 %v864_v24, 0.0  ;;  %v1160_v34 = vmax.f32 %v953_v25, 0.0 }
 0x1eb   : > { %v2162_v41 = vpop.f32.mrf.mxu0  ;;  %v2164_v32 = vpop.f32.mrf.mxu1 }
 0x1ec   : > { %1203 = vmatprep.subr.mxu0 %v1158_v33  ;;  %1274 = vmatprep.subr.mxu1 %v1160_v34  ;;  %v1111_v30 = vadd.f32 %v2164_v32, %v2156_v29 }
 0x1ed   : > { %v1023_v50 = vpop.f32.mrf.mxu0  ;;  %v1112_v40 = vpop.f32.mrf.mxu1  ;;  %1204 = vmatpush1.msra.mxu0 %v1157_v38  ;;  %1275 = vmatpush1.msra.mxu1 %v1159_v39 }
 0x1ee   : > { %1205 = vmatprep.subr.mxu0 %v1150_v44  ;;  %1276 = vmatprep.subr.mxu1 %v1152_v45  ;;  %v1024_v25 = vadd.f32 %v1023_v50, %v2156_v29  ;;  %v1139_v42 = vmax.f32 %v1111_v30, 0.0 }
 0x1ef   : > { %v1027_v58 = vpop.f32.mrf.mxu0  ;;  %v1116_v59 = vpop.f32.mrf.mxu1  ;;  %1206 = vmatpush1.msra.mxu0 %v1149_v48  ;;  %1277 = vmatpush1.msra.mxu1 %v1151_v49  ;;  %v1476_v48 = vunpack.c.l.s4 %v1807_v47 }
 0x1f0   : > { %1207 = vmatprep.subr.mxu0 %v1142_v54  ;;  %1278 = vmatprep.subr.mxu1 %v1144_v55  ;;  %v1028_v21 = vadd.f32 %v1027_v58, %v2152_v26  ;;  %v1117_v22 = vadd.f32 %v1116_v59, %v2152_v26  ;;  %v1138_v38 = vmax.f32 %v1024_v25, 0.0 }
 0x1f1   : > { %v1029_v63 = vpop.f32.mrf.mxu0  ;;  %v1118_v0 = vpop.f32.mrf.mxu1  ;;  %1208 = vmatpush1.msra.mxu0 %v1141_v56  ;;  %1279 = vmatpush1.msra.mxu1 %v1143_v57  ;;  %v1477_v54 = vunpack.c.0.s8 %v1476_v48 }
 0x1f2   : > { %1209 = vmatprep.subr.mxu0 %v1134_v37  ;;  %1280 = vmatprep.subr.mxu1 %v1136_v60  ;;  %v1030_v17 = vadd.f32 %v1029_v63, %v2152_v26  ;;  %v1119_v18 = vadd.f32 %v1118_v0, %v2152_v26  ;;  %v1145_v35 = vmax.f32 %v1028_v21, 0.0  ;;  %v1147_v36 = vmax.f32 %v1117_v22, 0.0 }
 0x1f3   : > { %v1033_v51 = vpop.f32.mrf.mxu0  ;;  %v1122_v3 = vpop.f32.mrf.mxu1  ;;  %1210 = vmatpush1.msra.mxu0 %v1133_v61  ;;  %1281 = vmatpush1.msra.mxu1 %v1135_v62 }
 0x1f4   : > { %1648 = vmatmul.mubr.msk.f32.vlgmr.msra.gmra.mxu0 %vm764_vm1, %v2173_v2  ;;  %1649 = vmatmul.mubr.msk.f32.vlgmr.msra.gmra.mxu1 %vm764_vm1, %v2173_v2  ;;  %v1034_v16 = vadd.f32 %v1033_v51, %v2144_v15  ;;  %v1146_v26 = vmax.f32 %v1030_v17, 0.0  ;;  %v1148_v34 = vmax.f32 %v1119_v18, 0.0 }
 0x1f5   : > { %v1035_v52 = vpop.f32.mrf.mxu0  ;;  %v1124_v53 = vpop.f32.mrf.mxu1  ;;  %1385 = vmatprep.mubr.f32.mxu0 %v1805_v1  ;;  %1456 = vmatprep.mubr.f32.mxu1 %v1805_v1  ;;  %v1123_v1 = vadd.f32 %v1122_v3, %v2144_v15 }
 0x1f6   : > { %v1036_v10 = vadd.f32 %v1035_v52, %v2144_v15  ;;  %v1125_v11 = vadd.f32 %v1124_v53, %v2144_v15  ;;  %v1022_v15 = vadd.f32 %v2162_v41, %v2156_v29  ;;  %v1153_v31 = vmax.f32 %v1034_v16, 0.0 }
 0x1f7   : > { %v1039_v4 = vpop.f32.mrf.mxu0  ;;  %v1128_v5 = vpop.f32.mrf.mxu1  ;;  %v1155_v33 = vmax.f32 %v1123_v1, 0.0 }
 0x1f8   : > { %v1040_v6 = vadd.f32 %v1039_v4, %v2142_v14  ;;  %v1129_v7 = vadd.f32 %v1128_v5, %v2142_v14  ;;  %v1154_v27 = vmax.f32 %v1036_v10, 0.0  ;;  %v1156_v28 = vmax.f32 %v1125_v11, 0.0 }
 0x1f9   : > { %v1041_v8 = vpop.f32.mrf.mxu0  ;;  %v1130_v9 = vpop.f32.mrf.mxu1  ;;  %v1137_v41 = vmax.f32 %v1022_v15, 0.0 }
 0x1fa   : > { %v1042_v12 = vadd.f32 %v1041_v8, %v2142_v14  ;;  %v1131_v13 = vadd.f32 %v1130_v9, %v2142_v14  ;;  %v1161_v23 = vmax.f32 %v1040_v6, 0.0  ;;  %v1163_v24 = vmax.f32 %v1129_v7, 0.0 }
 0x1fb   : > { %v1113_v14 = vadd.f32 %v1112_v40, %v2156_v29  ;;  %v1172_v29 = vlaneseq }
 0x1fc   : > { %v1162_v19 = vmax.f32 %v1042_v12, 0.0  ;;  %v1164_v20 = vmax.f32 %v1131_v13, 0.0 }
 0x1fd   : > { %v1140_v39 = vmax.f32 %v1113_v14, 0.0  ;;  %v1173_v32 = vshrl.u32 %v1172_v29, 7 }
 0x1fe   : > { %1345 = vmatprep.subr.mxu0 %v1162_v19  ;;  %1416 = vmatprep.subr.mxu1 %v1164_v20 }
 0x1ff   : > { %1346 = vmatpush1.msra.mxu0 %v1161_v23  ;;  %1417 = vmatpush1.msra.mxu1 %v1163_v24  ;;  %v1174_v45 = vsub.s32 0, %v1173_v32  ;;  %v1480_v59 = vsub.s32 %v1477_v54, %v1173_v32 }
 0x200   : > { %1347 = vmatprep.subr.mxu0 %v1154_v27  ;;  %1418 = vmatprep.subr.mxu1 %v1156_v28 }
 0x201   : > { %1348 = vmatpush1.msra.mxu0 %v1153_v31  ;;  %1419 = vmatpush1.msra.mxu1 %v1155_v33  ;;  %v1175_v40 = vrot.slane %v1170_v46, %v1174_v45 }
 0x202   : > { %1349 = vmatprep.subr.mxu0 %v1146_v26  ;;  %1420 = vmatprep.subr.mxu1 %v1148_v34 }
 0x203   : > { %1350 = vmatpush1.msra.mxu0 %v1145_v35  ;;  %1421 = vmatpush1.msra.mxu1 %v1147_v36 }
 0x204   : > { %1351 = vmatprep.subr.mxu0 %v1138_v38  ;;  %1422 = vmatprep.subr.mxu1 %v1140_v39 }
 0x205   : > { %1352 = vmatpush1.msra.mxu0 %v1137_v41  ;;  %1423 = vmatpush1.msra.mxu1 %v1139_v42 }
 0x206   : > { %1650 = vmatmul.mubr.msk.f32.vlgmr.msra.gmra.mxu0 %vm764_vm1, %v2173_v2  ;;  %1651 = vmatmul.mubr.msk.f32.vlgmr.msra.gmra.mxu1 %vm764_vm1, %v2173_v2 }
 0x2b4   : > { %v1245_v43 = vpop.f32.mrf.mxu0  ;;  %v1316_v44 = vpop.f32.mrf.mxu1 }
 0x2b5   : > { %v1246_v57 = vadd.f32 %v1245_v43, %v1175_v40  ;;  %v1317_v58 = vadd.f32 %v1316_v44, %v1175_v40 }
 0x2b6   : > { %v1247_v49 = vpop.f32.mrf.mxu0  ;;  %v1318_v50 = vpop.f32.mrf.mxu1 }
 0x2b7   : > { %v1248_v55 = vadd.f32 %v1247_v49, %v1175_v40  ;;  %v1319_v56 = vadd.f32 %v1318_v50, %v1175_v40 }
 0x2b9   : > { %v1471_v37 = vcombine.low %v1246_v57, %v1248_v55  ;;  %v1472_v60 = vcombine.low %v1317_v58, %v1319_v56 }
 0x2bb   : > { %v1481_v63 = vrot.slane %v1471_v37, %v1480_v59  ;;  %v1488_v0 = vrot.slane %v1472_v60, %v1480_v59 }
 0x2bd   : > { %v1503_v7 = vcombine.low %v1481_v63, %v1488_v0 }
 0x2bf   : > { %v1511_v11 = vrot.slane %v1503_v7, %v1480_v59 }
 0x2c6   : > { %v1387_v61 = vpop.f32.mrf.mxu0  ;;  %v1458_v62 = vpop.f32.mrf.mxu1 }
 0x2c7   : > { %v1388_v3 = vadd.f32 %v1387_v61, %v1175_v40  ;;  %v1459_v52 = vadd.f32 %v1458_v62, %v1175_v40 }
 0x2c8   : > { %v1389_v2 = vpop.f32.mrf.mxu0  ;;  %v1460_v51 = vpop.f32.mrf.mxu1 }
 0x2c9   : > { %v1390_v53 = vadd.f32 %v1389_v2, %v1175_v40  ;;  %v1461_v4 = vadd.f32 %v1460_v51, %v1175_v40 }
 0x2cb   : > { %v1473_v5 = vcombine.low %v1388_v3, %v1390_v53  ;;  %v1474_v6 = vcombine.low %v1459_v52, %v1461_v4 }
 0x2cd   : > { %v1495_v8 = vrot.slane %v1473_v5, %v1480_v59  ;;  %v1502_v9 = vrot.slane %v1474_v6, %v1480_v59 }
 0x2cf   : > { %v1504_v10 = vcombine.low %v1495_v8, %v1502_v9 }
 0x2d1   : > { %v1518_v12 = vrot.slane %v1504_v10, %v1480_v59 }
 0x2d3   : > { %v1519_v13 = vcombine.low %v1511_v11, %v1518_v12 }
 0x2d5   : > { %1521 = vst [vmem:[%s296_s19] sm:$0xff] %v1519_v13 }
 0x2d6   : > { %1751 = shalt.err (!%p1748_p10)
}
 0x2d7   : > { %s1752_s24 = scalar_lea.hbm %s1535_s10, 128  ;;  %s1756_s17 = scalar_lea.hbm %s2246_s7, 256 }
 0x2d8   : > { %p1753_p2 = scmp.ne.s32.totalorder %s1535_s10, %s1752_s24  ;;  %p1757_p7 = scmp.lt.s32.totalorder %s1535_s10, %s2246_s7 }
 0x2d9   : > { %p1758_p0 = scmp.lt.s32.totalorder %s1756_s17, %s1752_s24 }
 0x2da   : > { %p1754_p4 = pnand %p1753_p2, %p2257_p12 }
 0x2db   : > { %p1759_p6 = por %p1758_p0, %p1757_p7 }
 0x2dc   : > { %p1755_p9 = pneg %p1754_p4 }
 0x2de   : > { %p1760_p11 = pnand %p1759_p6, %p1755_p9 }
 0x2e0   : > { %1763 = shalt.err (!%p1760_p11)
}
 0x2e1   : > { %1661 = dma.vmem_to_hbm [thread:$0]  (%p2257_p12), %s1538_s20, 128, %s1535_s10, %s1523_s12  }
 0x2e2 PF: > { %s1549_s19 = sand.u32 1, %s1790_s26   ;;  %p2258_p13 = scmp.ne.s32.totalorder %s2252_s15, 0 }
 0x2e3   : > { %p2259_p1 = scmp.ge.s32.totalorder %s1802_s29, 2  ;;  %s1550_s22 = scalar_lea.sflag [#allocation5], %s1549_s19 }
 0x2e5   : > { %p1668_p3 = pnand %p2259_p1, %p2258_p13 }
 0x2e7   : > { %p1669_p5 = pneg %p1668_p3 }
 0x2e9   : > { %1785 = dma.done.wait (%p1669_p5), %s1550_s22, 128  }
 0x2ea   : > { %1787 = vsyncadd (%p1669_p5), %s1550_s22, 4294967168  ;;  %p22_p8 = scmp.ge.s32.totalorder %s1877_s8, 4   ;;  %s2260_s26 = smov %s1794_s27 }
 0x2eb   : > { %s2261_s27 = smov %s1798_s28  ;;  %s2262_s28 = smov %s1889_s11 }
 0x2ec   : > { %s2263_s29 = smov %s1877_s8  ;;  %24 = sbr.rel (!%p22_p8) target bundleno = 8 (0x8), region = 93 }
 0x2f1   :  { %1555 = vsyncpa [#allocation4], 1 }
 0x2f2   :  { %1557 = vsyncpa [#allocation4 + $0x1], 1 }
 0x2f3   :  { %1558 = vsyncpa [#allocation5], 1 }
 0x2f4   :  { %1560 = vsyncpa [#allocation5 + $0x1], 1 }

</bundles_post_ra>
